<compile_context>
chip_gen: v7x
topology: tpu7x:2x2x1
jax: 0.10.0
libtpu: 0.0.40
codegen_flags: <defaults>
</compile_context>

<pallas_src>
import functools

import jax
import jax.numpy as jnp
from jax.experimental import pallas as pl
from jax.experimental.pallas import tpu as pltpu

LANE = 128      # lane width (last-dim granularity)
SUBLANE = 8     # f32 sublane granularity (second-to-last dim)
IN_FEATURES = 784


def _round_up(n, m):
    return ((n + m - 1) // m) * m


def mnist_fc_kernel(x_ref, w1_ref, b1_ref, w2_ref, b2_ref, o_ref):
    # Two lane-dense MXU matmuls (bf16 operands, f32 accumulation) + bias+ReLU.
    x = x_ref[...]                                          # (TB, 784) bf16
    h = jnp.dot(x, w1_ref[...],
                preferred_element_type=jnp.float32)         # (TB, 128) f32
    h = jnp.maximum(h + b1_ref[...], 0.0)                   # bias + ReLU (f32)
    h = h.astype(w2_ref.dtype)                              # -> bf16 for MXU
    y = jnp.dot(h, w2_ref[...],
                preferred_element_type=jnp.float32)         # (TB, 128) f32
    y = jnp.maximum(y + b2_ref[...], 0.0)                   # bias + ReLU (f32)
    o_ref[...] = y.astype(o_ref.dtype)                      # full-lane vst


def pad_params(w1, b1, w2, b2, *, param_dtype=jnp.bfloat16):
    """One-time padding/casting of parameters (call once, outside the hot path).

    H -> 128 lanes, out -> 128 lanes, weights cast to bf16, biases kept f32.
    K (=784) is intentionally left unpadded.
    Zero padding is numerically inert: padded hidden/out columns are
    ReLU(0 + 0) = 0 and padded H rows of W2 contribute 0.
    """
    K, H = w1.shape
    n_out = w2.shape[1]
    Hp = _round_up(H, LANE)
    Op = _round_up(n_out, LANE)
    w1_p = jnp.pad(w1, ((0, 0), (0, Hp - H))).astype(param_dtype)
    b1_p = jnp.pad(b1, ((0, 0), (0, Hp - H))).astype(jnp.float32)
    w2_p = jnp.pad(w2, ((0, Hp - H), (0, Op - n_out))).astype(param_dtype)
    b2_p = jnp.pad(b2, ((0, 0), (0, Op - n_out))).astype(jnp.float32)
    return (w1_p, b1_p, w2_p, b2_p), n_out


@functools.partial(jax.jit,
                   static_argnames=("n_out", "batch_tile", "slice_output"))
def mnist_fc_forward(x_nchw, w1_p, b1_p, w2_p, b2_p, *,
                     n_out=10, batch_tile=256, slice_output=True):
    """x_nchw: (B, 1, 28, 28) f32. Pre-padded params from `pad_params`.
    Returns (B, n_out) f32 (or the padded (Bp, 128) slab if slice_output=False,
    so a downstream consumer can fuse the slice / argmax itself)."""
    B = x_nchw.shape[0]
    K = w1_p.shape[0]           # 784 (unpadded)
    Hp = w1_p.shape[1]          # 128
    Op = w2_p.shape[1]          # 128
    assert batch_tile % SUBLANE == 0

    # View((-1, 784)) — pure reshape, glue outside the kernel; cast x to bf16
    # (halves the activation DMA bytes; accumulation stays f32 in-kernel).
    x_flat = x_nchw.reshape(B, K).astype(w1_p.dtype)

    cost = pl.CostEstimate(
        flops=2 * B * (K * Hp + Hp * Op),
        transcendentals=0,
        bytes_accessed=(x_flat.size * x_flat.dtype.itemsize
                        + w1_p.size * w1_p.dtype.itemsize
                        + w2_p.size * w2_p.dtype.itemsize
                        + b1_p.size * 4 + b2_p.size * 4
                        + B * Op * 4),
    )

    if B <= batch_tile:
        # Single-shot: whole (tiny) arrays resident in VMEM, no pipelining
        # bookkeeping. Only the batch is padded (to a sublane multiple).
        Bp = max(_round_up(B, SUBLANE), SUBLANE)
        x_in = jnp.pad(x_flat, ((0, Bp - B), (0, 0))) if Bp != B else x_flat
        vmem = pl.BlockSpec(memory_space=pltpu.MemorySpace.VMEM)
        out_padded = pl.pallas_call(
            mnist_fc_kernel,
            out_shape=jax.ShapeDtypeStruct((Bp, Op), jnp.float32),
            in_specs=[vmem, vmem, vmem, vmem, vmem],
            out_specs=vmem,
            cost_estimate=cost,
        )(x_in, w1_p, b1_p, w2_p, b2_p)
    else:
        # Large batch: pipelined "parallel" batch grid. Weights/biases use a
        # constant index_map -> stay VMEM resident; x/out tiles double-buffer.
        # Tile sizes stay far below v5e's 16 MiB / v7x's 32 MiB scoped VMEM,
        # and the parallel axis shards across both TensorCores on v7x.
        Bp = _round_up(B, batch_tile)
        x_in = jnp.pad(x_flat, ((0, Bp - B), (0, 0))) if Bp != B else x_flat
        out_padded = pl.pallas_call(
            mnist_fc_kernel,
            out_shape=jax.ShapeDtypeStruct((Bp, Op), jnp.float32),
            grid=(Bp // batch_tile,),
            in_specs=[
                pl.BlockSpec((batch_tile, K), lambda i: (i, 0)),
                pl.BlockSpec((K, Hp), lambda i: (0, 0)),
                pl.BlockSpec((1, Hp), lambda i: (0, 0)),
                pl.BlockSpec((Hp, Op), lambda i: (0, 0)),
                pl.BlockSpec((1, Op), lambda i: (0, 0)),
            ],
            out_specs=pl.BlockSpec((batch_tile, Op), lambda i: (i, 0)),
            compiler_params=pltpu.CompilerParams(
                dimension_semantics=("parallel",)),
            cost_estimate=cost,
        )(x_in, w1_p, b1_p, w2_p, b2_p)

    if slice_output:
        # TODO(synk): fold this slice into the downstream consumer (loss /
        # argmax) instead of materializing it, per the perf review.
        return out_padded[:B, :n_out]
    return out_padded


def init_params(key, hidden_dim=28):
    """Deterministic PyTorch-style (Kaiming-uniform-ish) init. Weights stored
    as (in_features, out_features) so the kernel does x @ W + b."""
    k1, k2, k3, k4 = jax.random.split(key, 4)
    bound1 = 1.0 / jnp.sqrt(784.0)
    bound2 = 1.0 / jnp.sqrt(float(hidden_dim))
    w1 = jax.random.uniform(k1, (784, hidden_dim), jnp.float32, -bound1, bound1)
    b1 = jax.random.uniform(k2, (1, hidden_dim), jnp.float32, -bound1, bound1)
    w2 = jax.random.uniform(k3, (hidden_dim, 10), jnp.float32, -bound2, bound2)
    b2 = jax.random.uniform(k4, (1, 10), jnp.float32, -bound2, bound2)
    return w1, b1, w2, b2


if __name__ == "__main__":
    key = jax.random.PRNGKey(0)
    k_x, k_p = jax.random.split(key)

    hidden_dim = 28
    batch = 2
    x = jax.random.normal(k_x, (batch, 1, 28, 28), dtype=jnp.float32)
    w1, b1, w2, b2 = init_params(k_p, hidden_dim)

    # One-time parameter padding / bf16 cast (hoisted out of the hot path).
    (w1_p, b1_p, w2_p, b2_p), n_out = pad_params(w1, b1, w2, b2)

    # --- single-shot path (B <= batch_tile) ---
    out = mnist_fc_forward(x, w1_p, b1_p, w2_p, b2_p, n_out=n_out)
    out = jax.block_until_ready(out)

    # Reference using the same bf16-cast operands (accumulation in f32).
    def bf(a):
        return a.astype(jnp.bfloat16).astype(jnp.float32)

    x_flat = bf(x.reshape(batch, 784))
    h_ref = jnp.maximum(x_flat @ bf(w1) + b1, 0.0)
    ref = jnp.maximum(bf(h_ref) @ bf(w2) + b2, 0.0)
    assert out.shape == (batch, 10)
    assert jnp.allclose(out, ref, atol=2e-2, rtol=2e-2)

    # --- pipelined batch-grid path (B > batch_tile), kept small ---
    batch2 = 32
    x2 = jax.random.normal(jax.random.PRNGKey(1), (batch2, 1, 28, 28),
                           dtype=jnp.float32)
    out2 = mnist_fc_forward(x2, w1_p, b1_p, w2_p, b2_p,
                            n_out=n_out, batch_tile=16)
    out2 = jax.block_until_ready(out2)
    x2_flat = bf(x2.reshape(batch2, 784))
    h2_ref = jnp.maximum(x2_flat @ bf(w1) + b1, 0.0)
    ref2 = jnp.maximum(bf(h2_ref) @ bf(w2) + b2, 0.0)
    assert out2.shape == (batch2, 10)
    assert jnp.allclose(out2, ref2, atol=2e-2, rtol=2e-2)

    print("KERNEL_OK")
</pallas_src>

<mosaic_0001>
module attributes {stable_mosaic.version = 11 : i64} {
  func.func @mnist_fc_kernel(%arg0: memref<8x784xbf16, #tpu.memory_space<vmem>>, %arg1: memref<784x128xbf16, #tpu.memory_space<vmem>>, %arg2: memref<1x128xf32, #tpu.memory_space<vmem>>, %arg3: memref<128x128xbf16, #tpu.memory_space<vmem>>, %arg4: memref<1x128xf32, #tpu.memory_space<vmem>>, %arg5: memref<8x128xf32, #tpu.memory_space<vmem>>) attributes {dimension_semantics = [], scalar_prefetch = 0 : i64, scratch_operands = 0 : i64, tpu.core_type = #tpu.core_type<tc>} {
    %c0 = arith.constant 0 : index
    %c0_0 = arith.constant 0 : index
    %0 = vector.load %arg0[%c0, %c0_0] : memref<8x784xbf16, #tpu.memory_space<vmem>>, vector<8x784xbf16>
    %c0_1 = arith.constant 0 : index
    %c0_2 = arith.constant 0 : index
    %1 = vector.load %arg1[%c0_1, %c0_2] : memref<784x128xbf16, #tpu.memory_space<vmem>>, vector<784x128xbf16>
    %cst = arith.constant dense<0.000000e+00> : vector<8x128xf32>
    %2 = tpu.matmul %0, %1, %cst {dimension_numbers = #tpu.dot_dimension_numbers<[1], [0], [0], [1], [0, 0, 1, 1], [], []>} : vector<8x784xbf16>, vector<784x128xbf16>, vector<8x128xf32> -> vector<8x128xf32>
    %c0_3 = arith.constant 0 : index
    %c0_4 = arith.constant 0 : index
    %3 = vector.load %arg2[%c0_3, %c0_4] : memref<1x128xf32, #tpu.memory_space<vmem>>, vector<1x128xf32>
    %4 = vector.broadcast %3 : vector<1x128xf32> to vector<8x128xf32>
    %5 = arith.addf %2, %4 : vector<8x128xf32>
    %cst_5 = arith.constant 0.000000e+00 : f32
    %6 = vector.broadcast %cst_5 : f32 to vector<8x128xf32>
    %7 = arith.maximumf %5, %6 : vector<8x128xf32>
    %8 = arith.truncf %7 : vector<8x128xf32> to vector<8x128xbf16>
    %c0_6 = arith.constant 0 : index
    %c0_7 = arith.constant 0 : index
    %9 = vector.load %arg3[%c0_6, %c0_7] : memref<128x128xbf16, #tpu.memory_space<vmem>>, vector<128x128xbf16>
    %cst_8 = arith.constant dense<0.000000e+00> : vector<8x128xf32>
    %10 = tpu.matmul %8, %9, %cst_8 {dimension_numbers = #tpu.dot_dimension_numbers<[1], [0], [0], [1], [0, 0, 1, 1], [], []>} : vector<8x128xbf16>, vector<128x128xbf16>, vector<8x128xf32> -> vector<8x128xf32>
    %c0_9 = arith.constant 0 : index
    %c0_10 = arith.constant 0 : index
    %11 = vector.load %arg4[%c0_9, %c0_10] : memref<1x128xf32, #tpu.memory_space<vmem>>, vector<1x128xf32>
    %12 = vector.broadcast %11 : vector<1x128xf32> to vector<8x128xf32>
    %13 = arith.addf %10, %12 : vector<8x128xf32>
    %cst_11 = arith.constant 0.000000e+00 : f32
    %14 = vector.broadcast %cst_11 : f32 to vector<8x128xf32>
    %15 = arith.maximumf %13, %14 : vector<8x128xf32>
    %c0_12 = arith.constant 0 : index
    %c0_13 = arith.constant 0 : index
    %16 = vector.load %arg5[%c0_12, %c0_13] : memref<8x128xf32, #tpu.memory_space<vmem>>, vector<8x128xf32>
    tpu.vector_store %arg5[%c0_12, %c0_13], %15 {strides = array<i32>} : memref<8x128xf32, #tpu.memory_space<vmem>>, vector<8x128xf32>,
    return
  }
}

</mosaic_0001>

<bundles_post_ra>
// kernel: mnist_fc_forward.1
= control target key start
LH: loop header
LB: loop body
LE: loop exit
PB: predicated region body
PF: predicated region fallthrough
CT: control target
= control target key end

     0   :  { %10 = vsyncpa [#allocation3], 0  ;;  %s1009_s18 = smov [#allocation2]   ;;  %s1103_s0 = inlined_call_operand.vmem [shape: bf16[8,784], index: 0, kind: input, shape index: {}]   ;;  %s1104_s1 = inlined_call_operand.hbm [shape: bf16[784,128], index: 1, kind: input, shape index: {}]   ;;  %s1105_s2 = inlined_call_operand.vmem [shape: f32[1,128], index: 2, kind: input, shape index: {}]   ;;  %s1106_s3 = inlined_call_operand.vmem [shape: bf16[128,128], index: 3, kind: input, shape index: {}]   ;;  %s1107_s4 = inlined_call_operand.vmem [shape: f32[1,128], index: 4, kind: input, shape index: {}]   ;;  %s1108_s5 = inlined_call_operand.vmem [shape: f32[8,128], index: 5, kind: output, shape index: {}]  }
   0x1   :  { %s18_s19 = sshll.u32 %s1009_s18, 4  ;;  %s985_s22 = scalar_lea.hbm %s1104_s1, 6272  ;;  %s19_s19 = int_to_ptr.vmem [resolvable:$true] %s18_s19 }
   0x2   :  { %p986_p0 = scmp.ne.s32.totalorder %s1104_s1, %s985_s22  ;;  %p989_p1 = scmp.lt.u32.totalorder %s985_s22, %s1104_s1 }
   0x4   :  { %p991_p2 = pnand %p989_p1, %p986_p0 }
   0x6   :  { %994 = shalt.err (!%p991_p2)
}
   0x7   :  { %s995_s27 = scalar_lea.vmem %s19_s19, 6272  ;;  %p1000_p4 = scmp.lt.s32.totalorder %s19_s19, %s19_s19 }
   0x8   :  { %p996_p3 = scmp.ne.s32.totalorder %s19_s19, %s995_s27  ;;  %p1001_p5 = scmp.lt.s32.totalorder %s995_s27, %s995_s27 }
   0xa   :  { %p1002_p6 = por %p1001_p5, %p1000_p4 }
   0xc   :  { %p1003_p7 = pnand %p1002_p6, %p996_p3 }
   0xe   :  { %1006 = shalt.err (!%p1003_p7)
}
   0xf   :  { %s1010_s28 = smov 64   ;;  %s1011_s29 = smov 4  }
  0x10   :  { %24 = dma.hbm_to_vmem [thread:$0]  %s1104_s1, 6272, %s19_s19, [#allocation3], %s1010_s28, %s1010_s28, %s1011_s29  }
  0x11   :  { %1007 = dma.done.wait [#allocation3], 6272  }
  0x12   :  { %1008 = vsyncadd [#allocation3], 4294961024  ;;  %v921_v0 = vld [vmem:[#allocation2 + $0x40] sm:$0xff]   ;;  %v925_v4 = vld [vmem:[#allocation2 + $0x48] sm:$0xff]   ;;  %v1012_v43 = vmov 0.0   ;;  %vm1013_vm0 = vmmov 0  }
  0x13   :  { %v922_v1 = vld [vmem:[#allocation2] sm:$0xff]   ;;  %813 = vmatprep.subr.bf16.mxu0 %v921_v0  ;;  %v926_v5 = vld [vmem:[#allocation2 + $0x8] sm:$0xff]   ;;  %v929_v8 = vld [vmem:[#allocation2 + $0x50] sm:$0xff]   ;;  %vm462_vm1 = vcmask 130048  }
  0x14   :  { %v923_v2 = vld [vmem:[#allocation2 + $0xc0] sm:$0xff]   ;;  %814 = vmatpush3.bf16.msra.mxu0 %v922_v1  ;;  %v927_v6 = vld [vmem:[#allocation2 + $0xc8] sm:$0xff]   ;;  %v930_v9 = vld [vmem:[#allocation2 + $0x10] sm:$0xff]  }
  0x15   :  { %v924_v3 = vld [vmem:[#allocation2 + $0x80] sm:$0xff]   ;;  %835 = vmatprep.subr.bf16.mxu1 %v923_v2  ;;  %815 = vmatprep.subr.bf16.mxu0 %v925_v4  ;;  %v928_v7 = vld [vmem:[#allocation2 + $0x88] sm:$0xff]   ;;  %v931_v10 = vld [vmem:[#allocation2 + $0xd0] sm:$0xff]  }
  0x16   :  { %836 = vmatpush3.bf16.msra.mxu1 %v924_v3  ;;  %v932_v11 = vld [vmem:[#allocation2 + $0x90] sm:$0xff]   ;;  %v933_v12 = vld [vmem:[#allocation2 + $0x58] sm:$0xff]   ;;  %v937_v16 = vld [vmem:[#allocation2 + $0x60] sm:$0xff]  }
  0x17   :  { %837 = vmatprep.subr.bf16.mxu1 %v927_v6  ;;  %v934_v13 = vld [vmem:[#allocation2 + $0x18] sm:$0xff]   ;;  %v938_v17 = vld [vmem:[#allocation2 + $0x20] sm:$0xff]   ;;  %v941_v20 = vld [vmem:[#allocation2 + $0x68] sm:$0xff]  }
  0x18   :  { %816 = vmatpush3.bf16.msra.mxu0 %v926_v5  ;;  %v935_v14 = vld [vmem:[#allocation2 + $0xd8] sm:$0xff]   ;;  %v939_v18 = vld [vmem:[#allocation2 + $0xe0] sm:$0xff]   ;;  %v942_v21 = vld [vmem:[#allocation2 + $0x28] sm:$0xff]  }
  0x19   :  { %817 = vmatprep.subr.bf16.mxu0 %v929_v8  ;;  %v936_v15 = vld [vmem:[#allocation2 + $0x98] sm:$0xff]   ;;  %v940_v19 = vld [vmem:[#allocation2 + $0xa0] sm:$0xff]   ;;  %v943_v22 = vld [vmem:[#allocation2 + $0xe8] sm:$0xff]  }
  0x1a   :  { %838 = vmatpush3.bf16.msra.mxu1 %v928_v7  ;;  %v944_v23 = vld [vmem:[#allocation2 + $0xa8] sm:$0xff]   ;;  %v945_v24 = vld [vmem:[#allocation2 + $0x70] sm:$0xff]   ;;  %v949_v28 = vld [vmem:[#allocation2 + $0x78] sm:$0xff]  }
  0x1b   :  { %839 = vmatprep.subr.bf16.mxu1 %v931_v10  ;;  %v946_v25 = vld [vmem:[#allocation2 + $0x30] sm:$0xff]   ;;  %v950_v29 = vld [vmem:[#allocation2 + $0x38] sm:$0xff]   ;;  %v35_v31 = vld [vmem:[%s1103_s0] sm:$0xff] }
  0x1c   :  { %818 = vmatpush3.bf16.msra.mxu0 %v930_v9  ;;  %v947_v26 = vld [vmem:[#allocation2 + $0xf0] sm:$0xff]   ;;  %v951_v30 = vld [vmem:[#allocation2 + $0xf8] sm:$0xff]   ;;  %v747_v32 = vcombine.low %v35_v31, %v35_v31  ;;  %v748_v33 = vcombine.high %v35_v31, %v35_v31  ;;  %v955_v35 = vld [vmem:[#allocation2 + $0x140] sm:$0xff]  }
  0x1d   :  { %819 = vmatprep.subr.bf16.mxu0 %v933_v12  ;;  %v948_v27 = vld [vmem:[#allocation2 + $0xb0] sm:$0xff]   ;;  %v954_v34 = vld [vmem:[#allocation2 + $0xb8] sm:$0xff]   ;;  %v36_v36 = vld [vmem:[%s1103_s0 + $0x8] sm:$0xff] }
  0x1e   :  { %840 = vmatpush3.bf16.msra.mxu1 %v932_v11  ;;  %498 = vmatprep.mubr.bf16.mxu0 %v748_v33  ;;  %v749_v37 = vcombine.low %v36_v36, %v36_v36  ;;  %v750_v38 = vcombine.high %v36_v36, %v36_v36  ;;  %v958_v39 = vld [vmem:[#allocation2 + $0x100] sm:$0xff]   ;;  %v959_v40 = vld [vmem:[#allocation2 + $0x148] sm:$0xff]   ;;  %v961_v42 = vld [vmem:[#allocation2 + $0x150] sm:$0xff]  }
  0x1f   :  { %841 = vmatprep.subr.bf16.mxu1 %v935_v14  ;;  %v960_v41 = vld [vmem:[#allocation2 + $0x108] sm:$0xff]   ;;  %v962_v44 = vld [vmem:[#allocation2 + $0x110] sm:$0xff]   ;;  %v963_v45 = vld [vmem:[#allocation2 + $0x158] sm:$0xff]  }
  0x20   :  { %820 = vmatpush3.bf16.msra.mxu0 %v934_v13  ;;  %538 = vmatprep.mubr.bf16.mxu1 %v750_v38  ;;  %v964_v46 = vld [vmem:[#allocation2 + $0x118] sm:$0xff]   ;;  %v965_v47 = vld [vmem:[#allocation2 + $0x160] sm:$0xff]   ;;  %v967_v49 = vld [vmem:[#allocation2 + $0x168] sm:$0xff]  }
  0x21   :  { %821 = vmatprep.subr.bf16.mxu0 %v937_v16  ;;  %v966_v48 = vld [vmem:[#allocation2 + $0x120] sm:$0xff]   ;;  %v37_v51 = vld [vmem:[%s1103_s0 + $0x10] sm:$0xff]  ;;  %v968_v52 = vld [vmem:[#allocation2 + $0x128] sm:$0xff]  }
  0x22   :  { %842 = vmatpush3.bf16.msra.mxu1 %v936_v15  ;;  %v973_v50 = vld [vmem:[#allocation2 + $0x180] sm:$0xff]   ;;  %v752_v53 = vcombine.high %v37_v51, %v37_v51  ;;  %v976_v54 = vld [vmem:[%s1103_s0 + $0x18] ss:$0 sps:$4 sm:$0xff]   ;;  %v969_v55 = vld [vmem:[#allocation2 + $0x170] sm:$0xff]   ;;  %v751_v59 = vcombine.low %v37_v51, %v37_v51 }
  0x23   :  { %843 = vmatprep.subr.bf16.mxu1 %v939_v18  ;;  %v970_v56 = vld [vmem:[#allocation2 + $0x130] sm:$0xff]   ;;  %v971_v57 = vld [vmem:[#allocation2 + $0x178] sm:$0xff]   ;;  %v977_v60 = vld [vmem:[%s1106_s3] sm:$0xff]  }
  0x24   :  { %822 = vmatpush3.bf16.msra.mxu0 %v938_v17  ;;  %v972_v58 = vld [vmem:[#allocation2 + $0x138] sm:$0xff]   ;;  %v978_v61 = vld [vmem:[%s1106_s3 + $0x8] sm:$0xff]   ;;  %v979_v62 = vld [vmem:[%s1106_s3 + $0x10] sm:$0xff]  }
  0x25   :  { %823 = vmatprep.subr.bf16.mxu0 %v941_v20  ;;  %v980_v63 = vld [vmem:[%s1106_s3 + $0x18] sm:$0xff]   ;;  %v981_v0 = vld [vmem:[%s1106_s3 + $0x20] sm:$0xff]   ;;  %v982_v1 = vld [vmem:[%s1106_s3 + $0x28] sm:$0xff]  }
  0x26   :  { %844 = vmatpush3.bf16.msra.mxu1 %v940_v19  ;;  %v983_v2 = vld [vmem:[%s1106_s3 + $0x30] sm:$0xff]   ;;  %v984_v3 = vld [vmem:[%s1106_s3 + $0x38] sm:$0xff]   ;;  %v746_v5 = vld [vmem:[%s1105_s2] ss:$0 sm:$0xff] }
  0x27   :  { %845 = vmatprep.subr.bf16.mxu1 %v943_v22 }
  0x28   :  { %824 = vmatpush3.bf16.msra.mxu0 %v942_v21 }
  0x29   :  { %825 = vmatprep.subr.bf16.mxu0 %v945_v24 }
  0x2a   :  { %846 = vmatpush3.bf16.msra.mxu1 %v944_v23 }
  0x2b   :  { %847 = vmatprep.subr.bf16.mxu1 %v947_v26 }
  0x2c   :  { %826 = vmatpush3.bf16.msra.mxu0 %v946_v25 }
  0x2d   :  { %827 = vmatprep.subr.bf16.mxu0 %v949_v28 }
  0x2e   :  { %848 = vmatpush3.bf16.msra.mxu1 %v948_v27 }
  0x2f   :  { %849 = vmatprep.subr.bf16.mxu1 %v951_v30  ;;  %v804_v30 = vld [vmem:[%s1107_s4] ss:$0 sm:$0xff] }
  0x30   :  { %828 = vmatpush3.bf16.msra.mxu0 %v950_v29 }
  0x31   :  { %857 = vmatprep.subr.bf16.mxu0 %v955_v35 }
  0x32   :  { %850 = vmatpush3.bf16.msra.mxu1 %v954_v34 }
  0x33   :  { %499 = vmatmul.mubr.bf16.vlgmr.msra.gmra.mrb[0].mxu0 %v747_v32  ;;  %890 = vmatprep.subr.bf16.mxu1 %v1012_v43 }
  0x34   :  { %858 = vmatpush3.bf16.msra.mxu0 %v958_v39  ;;  %578 = vmatprep.mubr.bf16.mxu0 %v752_v53 }
  0x35   :  { %539 = vmatmul.mubr.bf16.vlgmr.msra.gmra.mrb[0].mxu1 %v749_v37  ;;  %859 = vmatprep.subr.bf16.mxu0 %v959_v40 }
  0x36   :  { %892 = vmatprep.mubr.msk.bf16.mxu1 %vm1013_vm0, %v1012_v43  ;;  %891 = vmatpush3.bf16.msra.mxu1 %v973_v50 }
  0x37   :  { %896 = vmatprep.subr.bf16.mxu1 %v1012_v43 }
  0x38   :  { %860 = vmatpush3.bf16.msra.mxu0 %v960_v41 }
  0x39   :  { %861 = vmatprep.subr.bf16.mxu0 %v961_v42 }
  0x3c   :  { %862 = vmatpush3.bf16.msra.mxu0 %v962_v44 }
  0x3d   :  { %863 = vmatprep.subr.bf16.mxu0 %v963_v45  ;;  %893 = vmatmul.mubr.msk.bf16.vlgmr.msra.gmra.mrb[4].mxu1 %vm462_vm1, %v976_v54 }
  0x3e   :  { %912 = vmatprep.mubr.msk.bf16.mxu1 %vm1013_vm0, %v1012_v43  ;;  %897 = vmatpush3.bf16.msra.mxu1 %v977_v60 }
  0x3f   :  { %898 = vmatprep.subr.bf16.mxu1 %v1012_v43 }
  0x40   :  { %864 = vmatpush3.bf16.msra.mxu0 %v964_v46 }
  0x41   :  { %865 = vmatprep.subr.bf16.mxu0 %v965_v47 }
  0x42   :  { %899 = vmatpush3.bf16.msra.mxu1 %v978_v61 }
  0x43   :  { %900 = vmatprep.subr.bf16.mxu1 %v1012_v43 }
  0x44   :  { %866 = vmatpush3.bf16.msra.mxu0 %v966_v48 }
  0x45   :  { %867 = vmatprep.subr.bf16.mxu0 %v967_v49 }
  0x46   :  { %901 = vmatpush3.bf16.msra.mxu1 %v979_v62 }
  0x47   :  { %902 = vmatprep.subr.bf16.mxu1 %v1012_v43 }
  0x48   :  { %868 = vmatpush3.bf16.msra.mxu0 %v968_v52 }
  0x49   :  { %869 = vmatprep.subr.bf16.mxu0 %v969_v55 }
  0x4a   :  { %903 = vmatpush3.bf16.msra.mxu1 %v980_v63 }
  0x4b   :  { %904 = vmatprep.subr.bf16.mxu1 %v1012_v43 }
  0x4c   :  { %870 = vmatpush3.bf16.msra.mxu0 %v970_v56 }
  0x4d   :  { %871 = vmatprep.subr.bf16.mxu0 %v971_v57 }
  0x4e   :  { %905 = vmatpush3.bf16.msra.mxu1 %v981_v0 }
  0x4f   :  { %906 = vmatprep.subr.bf16.mxu1 %v1012_v43 }
  0x50   :  { %872 = vmatpush3.bf16.msra.mxu0 %v972_v58 }
  0x52   :  { %907 = vmatpush3.bf16.msra.mxu1 %v982_v1 }
  0x53   :  { %579 = vmatmul.mubr.bf16.vlgmr.msra.gmra.mrb[4].mxu0 %v751_v59  ;;  %908 = vmatprep.subr.bf16.mxu1 %v1012_v43 }
  0x56   :  { %909 = vmatpush3.bf16.msra.mxu1 %v983_v2 }
  0x57   :  { %910 = vmatprep.subr.bf16.mxu1 %v1012_v43 }
  0x5a   :  { %911 = vmatpush3.bf16.msra.mxu1 %v984_v3 }
 0x106   :  { %v829_v4 = vpop.f32.mrb[0].mxu0 }
 0x107   :  { %v830_v6 = vpop.f32.mrb[1].mxu0 }
 0x108   :  { %v831_v7 = vadd.f32 %v830_v6, %v829_v4  ;;  %v832_v8 = vpop.f32.mrb[2].mxu0  ;;  %v851_v9 = vpop.f32.mrb[0].mxu1 }
 0x109   :  { %v833_v10 = vpop.f32.mrb[3].mxu0  ;;  %v852_v11 = vpop.f32.mrb[1].mxu1 }
 0x10a   :  { %v501_v12 = vadd.f32 %v831_v7, %v746_v5  ;;  %v853_v13 = vadd.f32 %v852_v11, %v851_v9  ;;  %v854_v14 = vpop.f32.mrb[2].mxu1 }
 0x10b   :  { %v855_v15 = vpop.f32.mrb[3].mxu1 }
 0x10c   :  { %v541_v16 = vadd.f32 %v853_v13, %v501_v12 }
 0x110   :  { %v620_v17 = vpop.f32.mrb[4].mxu1 }
 0x111   :  { %v894_v18 = vpop.f32.mrb[5].mxu1 }
 0x112   :  { %v623_v19 = vpop.f32.mrb[6].mxu1 }
 0x113   :  { %v895_v20 = vpop.f32.mrb[7].mxu1 }
 0x126   :  { %v873_v21 = vpop.f32.mrb[4].mxu0 }
 0x127   :  { %v874_v22 = vpop.f32.mrb[5].mxu0 }
 0x128   :  { %v875_v23 = vadd.f32 %v874_v22, %v873_v21  ;;  %v876_v24 = vpop.f32.mrb[6].mxu0 }
 0x129   :  { %v877_v25 = vpop.f32.mrb[7].mxu0 }
 0x12a   :  { %v581_v26 = vadd.f32 %v875_v23, %v541_v16 }
 0x12c   :  { %v621_v27 = vadd.f32 %v620_v17, %v581_v26 }
 0x12e   :  { %v626_v28 = vmax.f32 %v621_v27, 0.0 }
 0x130   :  { %v627_v29 = vpack.c.bf16 %v626_v28, %v626_v28 }
 0x132   :  { %913 = vmatmul.mubr.bf16.vlgmr.msra.gmra.mrb[8].mxu1 %v627_v29 }
 0x205   :  { %v733_v31 = vpop.f32.mrb[8].mxu1 }
 0x206   :  { %v734_v32 = vadd.f32 %v804_v30, %v733_v31  ;;  %v914_v33 = vpop.f32.mrb[9].mxu1 }
 0x207   :  { %v736_v34 = vpop.f32.mrb[10].mxu1 }
 0x208   :  { %v739_v35 = vmax.f32 %v734_v32, 0.0  ;;  %v915_v36 = vpop.f32.mrb[11].mxu1 }
 0x20a   :  { %740 = vst [vmem:[%s1108_s5] sm:$0xff] %v739_v35 }
 0x20b   :  { %745 = vsyncpa [#allocation3], 1 }

</bundles_post_ra>
